<compile_context>
chip_gen: v6e
topology: v6e:2x2x1
jax: 0.10.0
libtpu: 0.0.40
codegen_flags: <defaults>
</compile_context>

<pallas_src>
import functools

import jax
import jax.numpy as jnp
import numpy as np
from jax.experimental import pallas as pl
from jax.experimental.pallas import tpu as pltpu


def patch_embed_kernel(x_ref, w_ref, b_ref, masks_ref, mtok_ref, cls_ref,
                       se_ref, pos_ref, out_ref, *, mxu_dtype):
    # Shapes per grid step:
    #   x_ref:    (TB, TT, K)   flattened patch pixels (seq row 0 = cls slot;
    #                           its projection is discarded below)
    #   w_ref:    (K, H)        conv weight as matmul (constant block)
    #   b_ref:    (1, H)        conv bias
    #   masks_ref:(TB, TT, 1)   raw int32 mask ids (9 == padded patch)
    #   mtok_ref: (1, H)        mask token
    #   cls_ref:  (1, H)        cls token
    #   se_ref:   (S, H)        scale-embedding table
    #   pos_ref:  (1, TT, H)    positional embeddings (shared over batch)
    #   out_ref:  (TB, TT, H)
    tb, tt, _ = x_ref.shape
    scales = se_ref.shape[0]

    # Load constant operands once; reuse across the unrolled batch loop.
    w = w_ref[...]
    bias = b_ref[...]                       # (1, H)
    mtok = mtok_ref[...]                    # (1, H)
    pos = pos_ref[...][0]                   # (TT, H)
    if scales <= 4:
        se_rows = [se_ref[s:s + 1, :] for s in range(scales)]   # each (1, H)
    else:
        se_tbl = se_ref[...]                # (S, H)

    # cls row = cls token + pos[0]; only valid/selected in the first token tile.
    cls_val = cls_ref[...] + pos[0:1, :]                         # (1, H)
    row_ids = jax.lax.broadcasted_iota(jnp.int32, (tt, 1), 0)    # (TT, 1)
    is_cls = (row_ids == 0) & (pl.program_id(1) == 0)            # (TT, 1)

    for i in range(tb):                     # static unroll; tb is small (<=8)
        x = x_ref[i]                        # (TT, K)
        if mxu_dtype is not None and x.dtype != mxu_dtype:
            x = x.astype(mxu_dtype)         # cast tile on-chip; HBM stays f32
        emb = jnp.dot(x, w, preferred_element_type=jnp.float32) + bias

        m = masks_ref[i]                    # (TT, 1) int32
        # Single-select mask-token blend (masks==9 -> padded patch).
        emb = jnp.where(m == 9, mtok, emb)

        # Scale embedding (masks==9 remapped to 0, matching masks[masks==9]=0).
        mid = jnp.where(m == 9, 0, m)
        if scales <= 4:
            for s in range(scales):
                emb = emb + jnp.where(mid == s, se_rows[s], 0.0)
        else:
            # One-hot (TT, S) @ (S, H) on the MXU instead of 2*S VPU passes.
            iota = jax.lax.broadcasted_iota(jnp.int32, (1, scales), 1)
            onehot = (mid == iota).astype(jnp.float32)           # (TT, S)
            emb = emb + jnp.dot(onehot, se_tbl,
                                preferred_element_type=jnp.float32)

        emb = emb + pos
        # Row 0 of the sequence is the cls token (drops the projection of the
        # discarded patch[0]).
        emb = jnp.where(is_cls, cls_val, emb)
        out_ref[i] = emb.astype(out_ref.dtype)


def patch_embeddings_forward(patches, pos_embeds, masks, params, *,
                             tile_b=None, tile_t=None,
                             mxu_dtype=None, out_dtype=jnp.float32,
                             vmem_budget_bytes=24 * 1024 * 1024):
    """patches: (B, L+1, C, P, P); pos_embeds: (1, L+1, H); masks: (B, L+1) int.

    Returns the full (B, L+1, H) embedding (cls row included), written directly
    by the kernel in `out_dtype`.
    """
    w = params["proj_weight"]          # (H, C, P, P)  -- Conv2d weight
    b = params["proj_bias"]            # (H,)
    cls_token = params["cls_token"]    # (1, 1, H)
    mask_token = params["mask_token"]  # (1, 1, H)
    se = params["se"]                  # (1, scales, H)

    B, Lp1, C, P, _ = patches.shape
    H = w.shape[0]
    K = C * P * P
    scales = se.shape[1]

    if tile_t is None:
        tile_t = Lp1                   # default: whole token axis per grid step
    if Lp1 % tile_t != 0 or (tile_t != Lp1 and tile_t % 8 != 0):
        raise ValueError("tile_t must divide L+1 and be a multiple of 8 (or == L+1)")
    T = Lp1 // tile_t

    w_dtype = mxu_dtype if mxu_dtype is not None else jnp.float32
    x_isz = jnp.dtype(patches.dtype).itemsize
    w_isz = jnp.dtype(w_dtype).itemsize
    o_isz = jnp.dtype(out_dtype).itemsize

    def vmem_footprint(tb):
        # Streamed operands are double-buffered by the pipeline; constants are
        # counted double-buffered too (worst case if Buffered(1) is rejected).
        stream = 2 * tb * tile_t * (K * x_isz + H * o_isz + 4)      # x + out + masks
        consts = 2 * (K * H * w_isz + (3 + scales) * H * 4)         # w, b, mtok, cls, se
        posb = 2 * tile_t * H * 4
        return stream + consts + posb

    if tile_b is None:
        # Largest divisor of B (<= 8) whose footprint fits the budget. The
        # default 24 MiB budget stays under v7x's 32 MiB default scoped VMEM
        # and leaves plenty of slack on v5e/v6e (128 MiB physical).
        tile_b = 1
        for cand in range(min(B, 8), 0, -1):
            if B % cand == 0 and vmem_footprint(cand) <= vmem_budget_bytes:
                tile_b = cand
                break
    if B % tile_b != 0:
        raise ValueError("tile_b must divide B")

    # Cheap glue only: no (N,H)-sized materializations, and crucially NO dtype
    # cast of the big patch tensor in HBM (would cost an extra read+write pass).
    x = patches.reshape(B, Lp1, K)                                 # row 0 dropped in-kernel
    w2d = jnp.transpose(w.reshape(H, K)).astype(w_dtype)           # (K, H)
    b2d = b.reshape(1, H).astype(jnp.float32)
    masks3 = masks.astype(jnp.int32).reshape(B, Lp1, 1)
    mtok = mask_token.reshape(1, H).astype(jnp.float32)
    cls2d = cls_token.reshape(1, H).astype(jnp.float32)
    se2d = se.reshape(scales, H).astype(jnp.float32)
    pos = pos_embeds.reshape(1, Lp1, H).astype(jnp.float32)

    kernel = functools.partial(patch_embed_kernel, mxu_dtype=mxu_dtype)

    flops = 2 * B * Lp1 * K * H
    bytes_accessed = (B * Lp1 * K * x_isz + K * H * w_isz + B * Lp1 * 4
                      + Lp1 * H * 4 + (3 + scales) * H * 4
                      + B * Lp1 * H * o_isz)
    cost = pl.CostEstimate(flops=int(flops), transcendentals=0,
                           bytes_accessed=int(bytes_accessed))

    vlim = int(max(vmem_footprint(tile_b) + (4 << 20), 32 << 20))
    cparams = pltpu.CompilerParams(
        # Each (bi, ti) writes a disjoint output tile; 'parallel' lets the grid
        # shard across TensorCores on multi-TC parts (v7x).
        dimension_semantics=("parallel", "parallel"),
        vmem_limit_bytes=vlim)

    def build(single_buffer_consts):
        def const_spec(shape):
            zeros = (0,) * len(shape)
            if single_buffer_consts:
                return pl.BlockSpec(shape, lambda bi, ti: zeros,
                                    pipeline_mode=pl.Buffered(1))
            return pl.BlockSpec(shape, lambda bi, ti: zeros)

        pos_spec = (const_spec((1, tile_t, H)) if T == 1 else
                    pl.BlockSpec((1, tile_t, H), lambda bi, ti: (0, ti, 0)))
        return pl.pallas_call(
            kernel,
            out_shape=jax.ShapeDtypeStruct((B, Lp1, H), out_dtype),
            grid=(B // tile_b, T),
            in_specs=[
                pl.BlockSpec((tile_b, tile_t, K), lambda bi, ti: (bi, ti, 0)),  # x
                const_spec((K, H)),          # weight (constant block)
                const_spec((1, H)),          # bias
                pl.BlockSpec((tile_b, tile_t, 1), lambda bi, ti: (bi, ti, 0)),  # masks
                const_spec((1, H)),          # mask token
                const_spec((1, H)),          # cls token
                const_spec((scales, H)),     # scale-embedding table
                pos_spec,                    # positional embeddings
            ],
            out_specs=pl.BlockSpec((tile_b, tile_t, H),
                                   lambda bi, ti: (bi, ti, 0)),
            compiler_params=cparams,
            cost_estimate=cost,
        )

    args = (x, w2d, b2d, masks3, mtok, cls2d, se2d, pos)
    try:
        # Single-buffer the constant-index operands (the weight's 2nd buffer
        # alone is K*H*w_isz of dead VMEM at real ViT scale).
        return build(single_buffer_consts=True)(*args)
    except Exception:
        # pipeline_mode=pl.Buffered(1) not accepted by this jax build; constant
        # blocks are still only fetched once, just with a redundant 2nd buffer.
        return build(single_buffer_consts=False)(*args)


if __name__ == "__main__":
    B, L, C, P, H, scales = 2, 8, 3, 4, 32, 2

    key = jax.random.PRNGKey(0)
    ks = jax.random.split(key, 6)
    patches = jax.random.normal(ks[0], (B, L + 1, C, P, P), jnp.float32)
    pos_embeds = 0.02 * jax.random.normal(ks[1], (1, L + 1, H), jnp.float32)
    proj_weight = 0.02 * jax.random.normal(ks[2], (H, C, P, P), jnp.float32)
    proj_bias = 0.02 * jax.random.normal(ks[3], (H,), jnp.float32)
    cls_token = 0.02 * jax.random.normal(ks[4], (1, 1, H), jnp.float32)
    se = 0.02 * jax.random.normal(ks[5], (1, scales, H), jnp.float32)
    mask_token = jnp.zeros((1, 1, H), jnp.float32)  # nn.Parameter(zeros)

    # masks: values in {0..scales-1}, 9 marks padded patches
    masks = jnp.array([[0, 1, 0, 9, 1, 0, 9, 1, 0],
                       [1, 0, 9, 0, 1, 1, 0, 9, 0]], dtype=jnp.int32)

    params = dict(proj_weight=proj_weight, proj_bias=proj_bias,
                  cls_token=cls_token, mask_token=mask_token, se=se)

    # f32 path (tile_b auto-picked; here tile_b=B so grid=(1,1)).
    out = patch_embeddings_forward(patches, pos_embeds, masks, params)
    out = jax.block_until_ready(out)
    assert out.shape == (B, L + 1, H)

    # Pure-JAX reference of the same forward for a correctness check.
    xr = patches[:, 1:].reshape(B * L, C * P * P)
    ref = xr @ proj_weight.reshape(H, -1).T + proj_bias
    pmask = (masks == 9).astype(jnp.float32)[:, 1:].reshape(B * L, 1)
    ref = ref * (1.0 - pmask) + mask_token.reshape(1, H) * pmask
    mclean = jnp.where(masks == 9, 0, masks)
    ref = ref + se[0][mclean[:, 1:]].reshape(B * L, H)
    ref = ref.reshape(B, L, H) + pos_embeds[:, 1:, :]
    cls_ref = jnp.broadcast_to(cls_token, (B, 1, H)) + pos_embeds[:, :1, :]
    ref = jnp.concatenate([cls_ref, ref], axis=1)
    np.testing.assert_allclose(np.asarray(out), np.asarray(ref),
                               rtol=1e-5, atol=1e-5)

    # bf16 MXU issue (tile cast on-chip, f32 accumulation) + bf16 output
    # writeback — looser tolerance.
    out_bf16 = patch_embeddings_forward(patches, pos_embeds, masks, params,
                                        mxu_dtype=jnp.bfloat16,
                                        out_dtype=jnp.bfloat16)
    out_bf16 = jax.block_until_ready(out_bf16)
    np.testing.assert_allclose(np.asarray(out_bf16.astype(jnp.float32)),
                               np.asarray(ref), rtol=2e-2, atol=2e-2)

    print("KERNEL_OK")
</pallas_src>

<mosaic_0001>
module attributes {stable_mosaic.version = 11 : i64} {
  func.func @patch_embed_kernel(%arg0: i32, %arg1: i32, %arg2: memref<2x9x48xf32, #tpu.memory_space<vmem>>, %arg3: memref<48x32xf32, #tpu.memory_space<vmem>>, %arg4: memref<1x32xf32, #tpu.memory_space<vmem>>, %arg5: memref<2x9x1xi32, #tpu.memory_space<vmem>>, %arg6: memref<1x32xf32, #tpu.memory_space<vmem>>, %arg7: memref<1x32xf32, #tpu.memory_space<vmem>>, %arg8: memref<2x32xf32, #tpu.memory_space<vmem>>, %arg9: memref<1x9x32xf32, #tpu.memory_space<vmem>>, %arg10: memref<2x9x32xf32, #tpu.memory_space<vmem>>) attributes {dimension_semantics = [#tpu.dimension_semantics<parallel>, #tpu.dimension_semantics<parallel>], iteration_bounds = array<i64: 1, 1>, scalar_prefetch = 0 : i64, scratch_operands = 0 : i64, tpu.core_type = #tpu.core_type<tc>, window_params = [{transform_indices = @transform_0, window_bounds = array<i64: 2, 9, 48>}, {pipeline_mode = #tpu.pipeline_mode<synchronous>, transform_indices = @transform_1, window_bounds = array<i64: 48, 32>}, {pipeline_mode = #tpu.pipeline_mode<synchronous>, transform_indices = @transform_2, window_bounds = array<i64: 1, 32>}, {transform_indices = @transform_3, window_bounds = array<i64: 2, 9, 1>}, {pipeline_mode = #tpu.pipeline_mode<synchronous>, transform_indices = @transform_4, window_bounds = array<i64: 1, 32>}, {pipeline_mode = #tpu.pipeline_mode<synchronous>, transform_indices = @transform_5, window_bounds = array<i64: 1, 32>}, {pipeline_mode = #tpu.pipeline_mode<synchronous>, transform_indices = @transform_6, window_bounds = array<i64: 2, 32>}, {pipeline_mode = #tpu.pipeline_mode<synchronous>, transform_indices = @transform_7, window_bounds = array<i64: 1, 9, 32>}, {transform_indices = @transform_8, window_bounds = array<i64: 2, 9, 32>}]} {
    %c0 = arith.constant 0 : index
    %c0_0 = arith.constant 0 : index
    %0 = vector.load %arg3[%c0, %c0_0] : memref<48x32xf32, #tpu.memory_space<vmem>>, vector<48x32xf32>
    %c0_1 = arith.constant 0 : index
    %c0_2 = arith.constant 0 : index
    %1 = vector.load %arg4[%c0_1, %c0_2] : memref<1x32xf32, #tpu.memory_space<vmem>>, vector<1x32xf32>
    %c0_3 = arith.constant 0 : index
    %c0_4 = arith.constant 0 : index
    %2 = vector.load %arg6[%c0_3, %c0_4] : memref<1x32xf32, #tpu.memory_space<vmem>>, vector<1x32xf32>
    %c0_5 = arith.constant 0 : index
    %c0_6 = arith.constant 0 : index
    %c0_7 = arith.constant 0 : index
    %3 = vector.load %arg9[%c0_5, %c0_6, %c0_7] : memref<1x9x32xf32, #tpu.memory_space<vmem>>, vector<1x9x32xf32>
    %4 = vector.shape_cast %3 : vector<1x9x32xf32> to vector<9x32xf32>
    %c0_8 = arith.constant 0 : index
    %c0_9 = arith.constant 0 : index
    %5 = vector.load %arg8[%c0_8, %c0_9] : memref<2x32xf32, #tpu.memory_space<vmem>>, vector<1x32xf32>
    %c1 = arith.constant 1 : index
    %c0_10 = arith.constant 0 : index
    %6 = vector.load %arg8[%c1, %c0_10] : memref<2x32xf32, #tpu.memory_space<vmem>>, vector<1x32xf32>
    %c0_11 = arith.constant 0 : index
    %c0_12 = arith.constant 0 : index
    %7 = vector.load %arg7[%c0_11, %c0_12] : memref<1x32xf32, #tpu.memory_space<vmem>>, vector<1x32xf32>
    %8 = vector.extract_strided_slice %4 {offsets = [0, 0], sizes = [1, 32], strides = [1, 1]} : vector<9x32xf32> to vector<1x32xf32>
    %9 = arith.addf %7, %8 : vector<1x32xf32>
    %10 = tpu.iota {dimensions = array<i32: 0>} : vector<9x1xi32>
    %c0_i32 = arith.constant 0 : i32
    %11 = vector.broadcast %c0_i32 : i32 to vector<9x1xi32>
    %12 = arith.cmpi eq, %10, %11 : vector<9x1xi32>
    %c0_i32_13 = arith.constant 0 : i32
    %13 = arith.cmpi eq, %arg1, %c0_i32_13 : i32
    %14 = vector.broadcast %13 : i1 to vector<9x1xi1>
    %15 = arith.andi %12, %14 : vector<9x1xi1>
    %c0_14 = arith.constant 0 : index
    %c0_15 = arith.constant 0 : index
    %c0_16 = arith.constant 0 : index
    %16 = vector.load %arg2[%c0_14, %c0_15, %c0_16] : memref<2x9x48xf32, #tpu.memory_space<vmem>>, vector<1x9x48xf32>
    %17 = vector.shape_cast %16 : vector<1x9x48xf32> to vector<9x48xf32>
    %cst = arith.constant dense<0.000000e+00> : vector<9x32xf32>
    %18 = tpu.matmul %17, %0, %cst {dimension_numbers = #tpu.dot_dimension_numbers<[1], [0], [0], [1], [0, 0, 1, 1], [], []>} : vector<9x48xf32>, vector<48x32xf32>, vector<9x32xf32> -> vector<9x32xf32>
    %19 = vector.broadcast %1 : vector<1x32xf32> to vector<9x32xf32>
    %20 = arith.addf %18, %19 : vector<9x32xf32>
    %c0_17 = arith.constant 0 : index
    %c0_18 = arith.constant 0 : index
    %c0_19 = arith.constant 0 : index
    %21 = vector.load %arg5[%c0_17, %c0_18, %c0_19] : memref<2x9x1xi32, #tpu.memory_space<vmem>>, vector<1x9x1xi32>
    %22 = vector.shape_cast %21 : vector<1x9x1xi32> to vector<9x1xi32>
    %c9_i32 = arith.constant 9 : i32
    %23 = vector.broadcast %c9_i32 : i32 to vector<9x1xi32>
    %24 = arith.cmpi eq, %22, %23 : vector<9x1xi32>
    %25 = vector.shape_cast %24 : vector<9x1xi1> to vector<9x1xi1>
    %26 = vector.broadcast %25 : vector<9x1xi1> to vector<9x32xi1>
    %27 = vector.shape_cast %2 : vector<1x32xf32> to vector<1x32xf32>
    %28 = vector.broadcast %27 : vector<1x32xf32> to vector<9x32xf32>
    %29 = arith.select %26, %28, %20 : vector<9x32xi1>, vector<9x32xf32>
    %c9_i32_20 = arith.constant 9 : i32
    %30 = vector.broadcast %c9_i32_20 : i32 to vector<9x1xi32>
    %31 = arith.cmpi eq, %22, %30 : vector<9x1xi32>
    %c0_i32_21 = arith.constant 0 : i32
    %32 = vector.broadcast %c0_i32_21 : i32 to vector<9x1xi32>
    %33 = arith.select %31, %32, %22 : vector<9x1xi1>, vector<9x1xi32>
    %c0_i32_22 = arith.constant 0 : i32
    %34 = vector.broadcast %c0_i32_22 : i32 to vector<9x1xi32>
    %35 = arith.cmpi eq, %33, %34 : vector<9x1xi32>
    %cst_23 = arith.constant 0.000000e+00 : f32
    %36 = vector.shape_cast %35 : vector<9x1xi1> to vector<9x1xi1>
    %37 = vector.broadcast %36 : vector<9x1xi1> to vector<9x32xi1>
    %38 = vector.shape_cast %5 : vector<1x32xf32> to vector<1x32xf32>
    %39 = vector.broadcast %38 : vector<1x32xf32> to vector<9x32xf32>
    %40 = vector.broadcast %cst_23 : f32 to vector<9x32xf32>
    %41 = arith.select %37, %39, %40 : vector<9x32xi1>, vector<9x32xf32>
    %42 = arith.addf %29, %41 : vector<9x32xf32>
    %c1_i32 = arith.constant 1 : i32
    %43 = vector.broadcast %c1_i32 : i32 to vector<9x1xi32>
    %44 = arith.cmpi eq, %33, %43 : vector<9x1xi32>
    %cst_24 = arith.constant 0.000000e+00 : f32
    %45 = vector.shape_cast %44 : vector<9x1xi1> to vector<9x1xi1>
    %46 = vector.broadcast %45 : vector<9x1xi1> to vector<9x32xi1>
    %47 = vector.shape_cast %6 : vector<1x32xf32> to vector<1x32xf32>
    %48 = vector.broadcast %47 : vector<1x32xf32> to vector<9x32xf32>
    %49 = vector.broadcast %cst_24 : f32 to vector<9x32xf32>
    %50 = arith.select %46, %48, %49 : vector<9x32xi1>, vector<9x32xf32>
    %51 = arith.addf %42, %50 : vector<9x32xf32>
    %52 = arith.addf %51, %4 : vector<9x32xf32>
    %53 = vector.shape_cast %15 : vector<9x1xi1> to vector<9x1xi1>
    %54 = vector.broadcast %53 : vector<9x1xi1> to vector<9x32xi1>
    %55 = vector.shape_cast %9 : vector<1x32xf32> to vector<1x32xf32>
    %56 = vector.broadcast %55 : vector<1x32xf32> to vector<9x32xf32>
    %57 = arith.select %54, %56, %52 : vector<9x32xi1>, vector<9x32xf32>
    %c0_25 = arith.constant 0 : index
    %c0_26 = arith.constant 0 : index
    %c0_27 = arith.constant 0 : index
    %58 = vector.load %arg10[%c0_25, %c0_26, %c0_27] : memref<2x9x32xf32, #tpu.memory_space<vmem>>, vector<1x9x32xf32>
    %59 = vector.shape_cast %58 : vector<1x9x32xf32> to vector<9x32xf32>
    %60 = vector.shape_cast %57 : vector<9x32xf32> to vector<1x9x32xf32>
    tpu.vector_store %arg10[%c0_25, %c0_26, %c0_27], %60 {strides = array<i32>} : memref<2x9x32xf32, #tpu.memory_space<vmem>>, vector<1x9x32xf32>,
    %c1_28 = arith.constant 1 : index
    %c0_29 = arith.constant 0 : index
    %c0_30 = arith.constant 0 : index
    %61 = vector.load %arg2[%c1_28, %c0_29, %c0_30] : memref<2x9x48xf32, #tpu.memory_space<vmem>>, vector<1x9x48xf32>
    %62 = vector.shape_cast %61 : vector<1x9x48xf32> to vector<9x48xf32>
    %cst_31 = arith.constant dense<0.000000e+00> : vector<9x32xf32>
    %63 = tpu.matmul %62, %0, %cst_31 {dimension_numbers = #tpu.dot_dimension_numbers<[1], [0], [0], [1], [0, 0, 1, 1], [], []>} : vector<9x48xf32>, vector<48x32xf32>, vector<9x32xf32> -> vector<9x32xf32>
    %64 = vector.broadcast %1 : vector<1x32xf32> to vector<9x32xf32>
    %65 = arith.addf %63, %64 : vector<9x32xf32>
    %c1_32 = arith.constant 1 : index
    %c0_33 = arith.constant 0 : index
    %c0_34 = arith.constant 0 : index
    %66 = vector.load %arg5[%c1_32, %c0_33, %c0_34] : memref<2x9x1xi32, #tpu.memory_space<vmem>>, vector<1x9x1xi32>
    %67 = vector.shape_cast %66 : vector<1x9x1xi32> to vector<9x1xi32>
    %c9_i32_35 = arith.constant 9 : i32
    %68 = vector.broadcast %c9_i32_35 : i32 to vector<9x1xi32>
    %69 = arith.cmpi eq, %67, %68 : vector<9x1xi32>
    %70 = vector.shape_cast %69 : vector<9x1xi1> to vector<9x1xi1>
    %71 = vector.broadcast %70 : vector<9x1xi1> to vector<9x32xi1>
    %72 = vector.shape_cast %2 : vector<1x32xf32> to vector<1x32xf32>
    %73 = vector.broadcast %72 : vector<1x32xf32> to vector<9x32xf32>
    %74 = arith.select %71, %73, %65 : vector<9x32xi1>, vector<9x32xf32>
    %c9_i32_36 = arith.constant 9 : i32
    %75 = vector.broadcast %c9_i32_36 : i32 to vector<9x1xi32>
    %76 = arith.cmpi eq, %67, %75 : vector<9x1xi32>
    %c0_i32_37 = arith.constant 0 : i32
    %77 = vector.broadcast %c0_i32_37 : i32 to vector<9x1xi32>
    %78 = arith.select %76, %77, %67 : vector<9x1xi1>, vector<9x1xi32>
    %c0_i32_38 = arith.constant 0 : i32
    %79 = vector.broadcast %c0_i32_38 : i32 to vector<9x1xi32>
    %80 = arith.cmpi eq, %78, %79 : vector<9x1xi32>
    %cst_39 = arith.constant 0.000000e+00 : f32
    %81 = vector.shape_cast %80 : vector<9x1xi1> to vector<9x1xi1>
    %82 = vector.broadcast %81 : vector<9x1xi1> to vector<9x32xi1>
    %83 = vector.shape_cast %5 : vector<1x32xf32> to vector<1x32xf32>
    %84 = vector.broadcast %83 : vector<1x32xf32> to vector<9x32xf32>
    %85 = vector.broadcast %cst_39 : f32 to vector<9x32xf32>
    %86 = arith.select %82, %84, %85 : vector<9x32xi1>, vector<9x32xf32>
    %87 = arith.addf %74, %86 : vector<9x32xf32>
    %c1_i32_40 = arith.constant 1 : i32
    %88 = vector.broadcast %c1_i32_40 : i32 to vector<9x1xi32>
    %89 = arith.cmpi eq, %78, %88 : vector<9x1xi32>
    %cst_41 = arith.constant 0.000000e+00 : f32
    %90 = vector.shape_cast %89 : vector<9x1xi1> to vector<9x1xi1>
    %91 = vector.broadcast %90 : vector<9x1xi1> to vector<9x32xi1>
    %92 = vector.shape_cast %6 : vector<1x32xf32> to vector<1x32xf32>
    %93 = vector.broadcast %92 : vector<1x32xf32> to vector<9x32xf32>
    %94 = vector.broadcast %cst_41 : f32 to vector<9x32xf32>
    %95 = arith.select %91, %93, %94 : vector<9x32xi1>, vector<9x32xf32>
    %96 = arith.addf %87, %95 : vector<9x32xf32>
    %97 = arith.addf %96, %4 : vector<9x32xf32>
    %98 = vector.shape_cast %15 : vector<9x1xi1> to vector<9x1xi1>
    %99 = vector.broadcast %98 : vector<9x1xi1> to vector<9x32xi1>
    %100 = vector.shape_cast %9 : vector<1x32xf32> to vector<1x32xf32>
    %101 = vector.broadcast %100 : vector<1x32xf32> to vector<9x32xf32>
    %102 = arith.select %99, %101, %97 : vector<9x32xi1>, vector<9x32xf32>
    %c1_42 = arith.constant 1 : index
    %c0_43 = arith.constant 0 : index
    %c0_44 = arith.constant 0 : index
    %103 = vector.load %arg10[%c1_42, %c0_43, %c0_44] : memref<2x9x32xf32, #tpu.memory_space<vmem>>, vector<1x9x32xf32>
    %104 = vector.shape_cast %103 : vector<1x9x32xf32> to vector<9x32xf32>
    %105 = vector.shape_cast %102 : vector<9x32xf32> to vector<1x9x32xf32>
    tpu.vector_store %arg10[%c1_42, %c0_43, %c0_44], %105 {strides = array<i32>} : memref<2x9x32xf32, #tpu.memory_space<vmem>>, vector<1x9x32xf32>,
    return
  }
  func.func @transform_0(%arg0: i32, %arg1: i32) -> (i32, i32, i32) {
    %c0_i32 = arith.constant 0 : i32
    %c0_i32_0 = arith.constant 0 : i32
    return %arg0, %arg1, %c0_i32 : i32, i32, i32
  }
  func.func @transform_1(%arg0: i32, %arg1: i32) -> (i32, i32) {
    %c0_i32 = arith.constant 0 : i32
    %c0_i32_0 = arith.constant 0 : i32
    %c0_i32_1 = arith.constant 0 : i32
    return %c0_i32, %c0_i32_0 : i32, i32
  }
  func.func @transform_2(%arg0: i32, %arg1: i32) -> (i32, i32) {
    %c0_i32 = arith.constant 0 : i32
    %c0_i32_0 = arith.constant 0 : i32
    %c0_i32_1 = arith.constant 0 : i32
    return %c0_i32, %c0_i32_0 : i32, i32
  }
  func.func @transform_3(%arg0: i32, %arg1: i32) -> (i32, i32, i32) {
    %c0_i32 = arith.constant 0 : i32
    %c0_i32_0 = arith.constant 0 : i32
    return %arg0, %arg1, %c0_i32 : i32, i32, i32
  }
  func.func @transform_4(%arg0: i32, %arg1: i32) -> (i32, i32) {
    %c0_i32 = arith.constant 0 : i32
    %c0_i32_0 = arith.constant 0 : i32
    %c0_i32_1 = arith.constant 0 : i32
    return %c0_i32, %c0_i32_0 : i32, i32
  }
  func.func @transform_5(%arg0: i32, %arg1: i32) -> (i32, i32) {
    %c0_i32 = arith.constant 0 : i32
    %c0_i32_0 = arith.constant 0 : i32
    %c0_i32_1 = arith.constant 0 : i32
    return %c0_i32, %c0_i32_0 : i32, i32
  }
  func.func @transform_6(%arg0: i32, %arg1: i32) -> (i32, i32) {
    %c0_i32 = arith.constant 0 : i32
    %c0_i32_0 = arith.constant 0 : i32
    %c0_i32_1 = arith.constant 0 : i32
    return %c0_i32, %c0_i32_0 : i32, i32
  }
  func.func @transform_7(%arg0: i32, %arg1: i32) -> (i32, i32, i32) {
    %c0_i32 = arith.constant 0 : i32
    %c0_i32_0 = arith.constant 0 : i32
    %c0_i32_1 = arith.constant 0 : i32
    %c0_i32_2 = arith.constant 0 : i32
    return %c0_i32, %c0_i32_0, %c0_i32_1 : i32, i32, i32
  }
  func.func @transform_8(%arg0: i32, %arg1: i32) -> (i32, i32, i32) {
    %c0_i32 = arith.constant 0 : i32
    %c0_i32_0 = arith.constant 0 : i32
    return %arg0, %arg1, %c0_i32 : i32, i32, i32
  }
}

module attributes {stable_mosaic.version = 11 : i64} {
  func.func @patch_embed_kernel(%arg0: i32, %arg1: i32, %arg2: memref<2x9x48xf32, #tpu.memory_space<vmem>>, %arg3: memref<48x32xf32, #tpu.memory_space<vmem>>, %arg4: memref<1x32xf32, #tpu.memory_space<vmem>>, %arg5: memref<2x9x1xi32, #tpu.memory_space<vmem>>, %arg6: memref<1x32xf32, #tpu.memory_space<vmem>>, %arg7: memref<1x32xf32, #tpu.memory_space<vmem>>, %arg8: memref<2x32xf32, #tpu.memory_space<vmem>>, %arg9: memref<1x9x32xf32, #tpu.memory_space<vmem>>, %arg10: memref<2x9x32xf32, #tpu.memory_space<vmem>>) attributes {dimension_semantics = [#tpu.dimension_semantics<parallel>, #tpu.dimension_semantics<parallel>], iteration_bounds = array<i64: 1, 1>, scalar_prefetch = 0 : i64, scratch_operands = 0 : i64, tpu.core_type = #tpu.core_type<tc>, window_params = [{transform_indices = @transform_0, window_bounds = array<i64: 2, 9, 48>}, {pipeline_mode = #tpu.pipeline_mode<synchronous>, transform_indices = @transform_1, window_bounds = array<i64: 48, 32>}, {pipeline_mode = #tpu.pipeline_mode<synchronous>, transform_indices = @transform_2, window_bounds = array<i64: 1, 32>}, {transform_indices = @transform_3, window_bounds = array<i64: 2, 9, 1>}, {pipeline_mode = #tpu.pipeline_mode<synchronous>, transform_indices = @transform_4, window_bounds = array<i64: 1, 32>}, {pipeline_mode = #tpu.pipeline_mode<synchronous>, transform_indices = @transform_5, window_bounds = array<i64: 1, 32>}, {pipeline_mode = #tpu.pipeline_mode<synchronous>, transform_indices = @transform_6, window_bounds = array<i64: 2, 32>}, {pipeline_mode = #tpu.pipeline_mode<synchronous>, transform_indices = @transform_7, window_bounds = array<i64: 1, 9, 32>}, {transform_indices = @transform_8, window_bounds = array<i64: 2, 9, 32>}]} {
    %c0 = arith.constant 0 : index
    %c0_0 = arith.constant 0 : index
    %0 = vector.load %arg3[%c0, %c0_0] : memref<48x32xf32, #tpu.memory_space<vmem>>, vector<48x32xf32>
    %c0_1 = arith.constant 0 : index
    %c0_2 = arith.constant 0 : index
    %1 = vector.load %arg4[%c0_1, %c0_2] : memref<1x32xf32, #tpu.memory_space<vmem>>, vector<1x32xf32>
    %c0_3 = arith.constant 0 : index
    %c0_4 = arith.constant 0 : index
    %2 = vector.load %arg6[%c0_3, %c0_4] : memref<1x32xf32, #tpu.memory_space<vmem>>, vector<1x32xf32>
    %c0_5 = arith.constant 0 : index
    %c0_6 = arith.constant 0 : index
    %c0_7 = arith.constant 0 : index
    %3 = vector.load %arg9[%c0_5, %c0_6, %c0_7] : memref<1x9x32xf32, #tpu.memory_space<vmem>>, vector<1x9x32xf32>
    %4 = vector.shape_cast %3 : vector<1x9x32xf32> to vector<9x32xf32>
    %c0_8 = arith.constant 0 : index
    %c0_9 = arith.constant 0 : index
    %5 = vector.load %arg8[%c0_8, %c0_9] : memref<2x32xf32, #tpu.memory_space<vmem>>, vector<1x32xf32>
    %c1 = arith.constant 1 : index
    %c0_10 = arith.constant 0 : index
    %6 = vector.load %arg8[%c1, %c0_10] : memref<2x32xf32, #tpu.memory_space<vmem>>, vector<1x32xf32>
    %c0_11 = arith.constant 0 : index
    %c0_12 = arith.constant 0 : index
    %7 = vector.load %arg7[%c0_11, %c0_12] : memref<1x32xf32, #tpu.memory_space<vmem>>, vector<1x32xf32>
    %8 = vector.extract_strided_slice %4 {offsets = [0, 0], sizes = [1, 32], strides = [1, 1]} : vector<9x32xf32> to vector<1x32xf32>
    %9 = arith.addf %7, %8 : vector<1x32xf32>
    %10 = tpu.iota {dimensions = array<i32: 0>} : vector<9x1xi32>
    %c0_i32 = arith.constant 0 : i32
    %11 = vector.broadcast %c0_i32 : i32 to vector<9x1xi32>
    %12 = arith.cmpi eq, %10, %11 : vector<9x1xi32>
    %c0_i32_13 = arith.constant 0 : i32
    %13 = arith.cmpi eq, %arg1, %c0_i32_13 : i32
    %14 = vector.broadcast %13 : i1 to vector<9x1xi1>
    %15 = arith.andi %12, %14 : vector<9x1xi1>
    %c0_14 = arith.constant 0 : index
    %c0_15 = arith.constant 0 : index
    %c0_16 = arith.constant 0 : index
    %16 = vector.load %arg2[%c0_14, %c0_15, %c0_16] : memref<2x9x48xf32, #tpu.memory_space<vmem>>, vector<1x9x48xf32>
    %17 = vector.shape_cast %16 : vector<1x9x48xf32> to vector<9x48xf32>
    %cst = arith.constant dense<0.000000e+00> : vector<9x32xf32>
    %18 = tpu.matmul %17, %0, %cst {dimension_numbers = #tpu.dot_dimension_numbers<[1], [0], [0], [1], [0, 0, 1, 1], [], []>} : vector<9x48xf32>, vector<48x32xf32>, vector<9x32xf32> -> vector<9x32xf32>
    %19 = vector.broadcast %1 : vector<1x32xf32> to vector<9x32xf32>
    %20 = arith.addf %18, %19 : vector<9x32xf32>
    %c0_17 = arith.constant 0 : index
    %c0_18 = arith.constant 0 : index
    %c0_19 = arith.constant 0 : index
    %21 = vector.load %arg5[%c0_17, %c0_18, %c0_19] : memref<2x9x1xi32, #tpu.memory_space<vmem>>, vector<1x9x1xi32>
    %22 = vector.shape_cast %21 : vector<1x9x1xi32> to vector<9x1xi32>
    %c9_i32 = arith.constant 9 : i32
    %23 = vector.broadcast %c9_i32 : i32 to vector<9x1xi32>
    %24 = arith.cmpi eq, %22, %23 : vector<9x1xi32>
    %25 = vector.shape_cast %24 : vector<9x1xi1> to vector<9x1xi1>
    %26 = vector.broadcast %25 : vector<9x1xi1> to vector<9x32xi1>
    %27 = vector.shape_cast %2 : vector<1x32xf32> to vector<1x32xf32>
    %28 = vector.broadcast %27 : vector<1x32xf32> to vector<9x32xf32>
    %29 = arith.select %26, %28, %20 : vector<9x32xi1>, vector<9x32xf32>
    %c9_i32_20 = arith.constant 9 : i32
    %30 = vector.broadcast %c9_i32_20 : i32 to vector<9x1xi32>
    %31 = arith.cmpi eq, %22, %30 : vector<9x1xi32>
    %c0_i32_21 = arith.constant 0 : i32
    %32 = vector.broadcast %c0_i32_21 : i32 to vector<9x1xi32>
    %33 = arith.select %31, %32, %22 : vector<9x1xi1>, vector<9x1xi32>
    %c0_i32_22 = arith.constant 0 : i32
    %34 = vector.broadcast %c0_i32_22 : i32 to vector<9x1xi32>
    %35 = arith.cmpi eq, %33, %34 : vector<9x1xi32>
    %cst_23 = arith.constant 0.000000e+00 : f32
    %36 = vector.shape_cast %35 : vector<9x1xi1> to vector<9x1xi1>
    %37 = vector.broadcast %36 : vector<9x1xi1> to vector<9x32xi1>
    %38 = vector.shape_cast %5 : vector<1x32xf32> to vector<1x32xf32>
    %39 = vector.broadcast %38 : vector<1x32xf32> to vector<9x32xf32>
    %40 = vector.broadcast %cst_23 : f32 to vector<9x32xf32>
    %41 = arith.select %37, %39, %40 : vector<9x32xi1>, vector<9x32xf32>
    %42 = arith.addf %29, %41 : vector<9x32xf32>
    %c1_i32 = arith.constant 1 : i32
    %43 = vector.broadcast %c1_i32 : i32 to vector<9x1xi32>
    %44 = arith.cmpi eq, %33, %43 : vector<9x1xi32>
    %cst_24 = arith.constant 0.000000e+00 : f32
    %45 = vector.shape_cast %44 : vector<9x1xi1> to vector<9x1xi1>
    %46 = vector.broadcast %45 : vector<9x1xi1> to vector<9x32xi1>
    %47 = vector.shape_cast %6 : vector<1x32xf32> to vector<1x32xf32>
    %48 = vector.broadcast %47 : vector<1x32xf32> to vector<9x32xf32>
    %49 = vector.broadcast %cst_24 : f32 to vector<9x32xf32>
    %50 = arith.select %46, %48, %49 : vector<9x32xi1>, vector<9x32xf32>
    %51 = arith.addf %42, %50 : vector<9x32xf32>
    %52 = arith.addf %51, %4 : vector<9x32xf32>
    %53 = vector.shape_cast %15 : vector<9x1xi1> to vector<9x1xi1>
    %54 = vector.broadcast %53 : vector<9x1xi1> to vector<9x32xi1>
    %55 = vector.shape_cast %9 : vector<1x32xf32> to vector<1x32xf32>
    %56 = vector.broadcast %55 : vector<1x32xf32> to vector<9x32xf32>
    %57 = arith.select %54, %56, %52 : vector<9x32xi1>, vector<9x32xf32>
    %c0_25 = arith.constant 0 : index
    %c0_26 = arith.constant 0 : index
    %c0_27 = arith.constant 0 : index
    %58 = vector.load %arg10[%c0_25, %c0_26, %c0_27] : memref<2x9x32xf32, #tpu.memory_space<vmem>>, vector<1x9x32xf32>
    %59 = vector.shape_cast %58 : vector<1x9x32xf32> to vector<9x32xf32>
    %60 = vector.shape_cast %57 : vector<9x32xf32> to vector<1x9x32xf32>
    tpu.vector_store %arg10[%c0_25, %c0_26, %c0_27], %60 {strides = array<i32>} : memref<2x9x32xf32, #tpu.memory_space<vmem>>, vector<1x9x32xf32>,
    %c1_28 = arith.constant 1 : index
    %c0_29 = arith.constant 0 : index
    %c0_30 = arith.constant 0 : index
    %61 = vector.load %arg2[%c1_28, %c0_29, %c0_30] : memref<2x9x48xf32, #tpu.memory_space<vmem>>, vector<1x9x48xf32>
    %62 = vector.shape_cast %61 : vector<1x9x48xf32> to vector<9x48xf32>
    %cst_31 = arith.constant dense<0.000000e+00> : vector<9x32xf32>
    %63 = tpu.matmul %62, %0, %cst_31 {dimension_numbers = #tpu.dot_dimension_numbers<[1], [0], [0], [1], [0, 0, 1, 1], [], []>} : vector<9x48xf32>, vector<48x32xf32>, vector<9x32xf32> -> vector<9x32xf32>
    %64 = vector.broadcast %1 : vector<1x32xf32> to vector<9x32xf32>
    %65 = arith.addf %63, %64 : vector<9x32xf32>
    %c1_32 = arith.constant 1 : index
    %c0_33 = arith.constant 0 : index
    %c0_34 = arith.constant 0 : index
    %66 = vector.load %arg5[%c1_32, %c0_33, %c0_34] : memref<2x9x1xi32, #tpu.memory_space<vmem>>, vector<1x9x1xi32>
    %67 = vector.shape_cast %66 : vector<1x9x1xi32> to vector<9x1xi32>
    %c9_i32_35 = arith.constant 9 : i32
    %68 = vector.broadcast %c9_i32_35 : i32 to vector<9x1xi32>
    %69 = arith.cmpi eq, %67, %68 : vector<9x1xi32>
    %70 = vector.shape_cast %69 : vector<9x1xi1> to vector<9x1xi1>
    %71 = vector.broadcast %70 : vector<9x1xi1> to vector<9x32xi1>
    %72 = vector.shape_cast %2 : vector<1x32xf32> to vector<1x32xf32>
    %73 = vector.broadcast %72 : vector<1x32xf32> to vector<9x32xf32>
    %74 = arith.select %71, %73, %65 : vector<9x32xi1>, vector<9x32xf32>
    %c9_i32_36 = arith.constant 9 : i32
    %75 = vector.broadcast %c9_i32_36 : i32 to vector<9x1xi32>
    %76 = arith.cmpi eq, %67, %75 : vector<9x1xi32>
    %c0_i32_37 = arith.constant 0 : i32
    %77 = vector.broadcast %c0_i32_37 : i32 to vector<9x1xi32>
    %78 = arith.select %76, %77, %67 : vector<9x1xi1>, vector<9x1xi32>
    %c0_i32_38 = arith.constant 0 : i32
    %79 = vector.broadcast %c0_i32_38 : i32 to vector<9x1xi32>
    %80 = arith.cmpi eq, %78, %79 : vector<9x1xi32>
    %cst_39 = arith.constant 0.000000e+00 : f32
    %81 = vector.shape_cast %80 : vector<9x1xi1> to vector<9x1xi1>
    %82 = vector.broadcast %81 : vector<9x1xi1> to vector<9x32xi1>
    %83 = vector.shape_cast %5 : vector<1x32xf32> to vector<1x32xf32>
    %84 = vector.broadcast %83 : vector<1x32xf32> to vector<9x32xf32>
    %85 = vector.broadcast %cst_39 : f32 to vector<9x32xf32>
    %86 = arith.select %82, %84, %85 : vector<9x32xi1>, vector<9x32xf32>
    %87 = arith.addf %74, %86 : vector<9x32xf32>
    %c1_i32_40 = arith.constant 1 : i32
    %88 = vector.broadcast %c1_i32_40 : i32 to vector<9x1xi32>
    %89 = arith.cmpi eq, %78, %88 : vector<9x1xi32>
    %cst_41 = arith.constant 0.000000e+00 : f32
    %90 = vector.shape_cast %89 : vector<9x1xi1> to vector<9x1xi1>
    %91 = vector.broadcast %90 : vector<9x1xi1> to vector<9x32xi1>
    %92 = vector.shape_cast %6 : vector<1x32xf32> to vector<1x32xf32>
    %93 = vector.broadcast %92 : vector<1x32xf32> to vector<9x32xf32>
    %94 = vector.broadcast %cst_41 : f32 to vector<9x32xf32>
    %95 = arith.select %91, %93, %94 : vector<9x32xi1>, vector<9x32xf32>
    %96 = arith.addf %87, %95 : vector<9x32xf32>
    %97 = arith.addf %96, %4 : vector<9x32xf32>
    %98 = vector.shape_cast %15 : vector<9x1xi1> to vector<9x1xi1>
    %99 = vector.broadcast %98 : vector<9x1xi1> to vector<9x32xi1>
    %100 = vector.shape_cast %9 : vector<1x32xf32> to vector<1x32xf32>
    %101 = vector.broadcast %100 : vector<1x32xf32> to vector<9x32xf32>
    %102 = arith.select %99, %101, %97 : vector<9x32xi1>, vector<9x32xf32>
    %c1_42 = arith.constant 1 : index
    %c0_43 = arith.constant 0 : index
    %c0_44 = arith.constant 0 : index
    %103 = vector.load %arg10[%c1_42, %c0_43, %c0_44] : memref<2x9x32xf32, #tpu.memory_space<vmem>>, vector<1x9x32xf32>
    %104 = vector.shape_cast %103 : vector<1x9x32xf32> to vector<9x32xf32>
    %105 = vector.shape_cast %102 : vector<9x32xf32> to vector<1x9x32xf32>
    tpu.vector_store %arg10[%c1_42, %c0_43, %c0_44], %105 {strides = array<i32>} : memref<2x9x32xf32, #tpu.memory_space<vmem>>, vector<1x9x32xf32>,
    return
  }
  func.func @transform_0(%arg0: i32, %arg1: i32) -> (i32, i32, i32) {
    %c0_i32 = arith.constant 0 : i32
    %c0_i32_0 = arith.constant 0 : i32
    return %arg0, %arg1, %c0_i32 : i32, i32, i32
  }
  func.func @transform_1(%arg0: i32, %arg1: i32) -> (i32, i32) {
    %c0_i32 = arith.constant 0 : i32
    %c0_i32_0 = arith.constant 0 : i32
    %c0_i32_1 = arith.constant 0 : i32
    return %c0_i32, %c0_i32_0 : i32, i32
  }
  func.func @transform_2(%arg0: i32, %arg1: i32) -> (i32, i32) {
    %c0_i32 = arith.constant 0 : i32
    %c0_i32_0 = arith.constant 0 : i32
    %c0_i32_1 = arith.constant 0 : i32
    return %c0_i32, %c0_i32_0 : i32, i32
  }
  func.func @transform_3(%arg0: i32, %arg1: i32) -> (i32, i32, i32) {
    %c0_i32 = arith.constant 0 : i32
    %c0_i32_0 = arith.constant 0 : i32
    return %arg0, %arg1, %c0_i32 : i32, i32, i32
  }
  func.func @transform_4(%arg0: i32, %arg1: i32) -> (i32, i32) {
    %c0_i32 = arith.constant 0 : i32
    %c0_i32_0 = arith.constant 0 : i32
    %c0_i32_1 = arith.constant 0 : i32
    return %c0_i32, %c0_i32_0 : i32, i32
  }
  func.func @transform_5(%arg0: i32, %arg1: i32) -> (i32, i32) {
    %c0_i32 = arith.constant 0 : i32
    %c0_i32_0 = arith.constant 0 : i32
    %c0_i32_1 = arith.constant 0 : i32
    return %c0_i32, %c0_i32_0 : i32, i32
  }
  func.func @transform_6(%arg0: i32, %arg1: i32) -> (i32, i32) {
    %c0_i32 = arith.constant 0 : i32
    %c0_i32_0 = arith.constant 0 : i32
    %c0_i32_1 = arith.constant 0 : i32
    return %c0_i32, %c0_i32_0 : i32, i32
  }
  func.func @transform_7(%arg0: i32, %arg1: i32) -> (i32, i32, i32) {
    %c0_i32 = arith.constant 0 : i32
    %c0_i32_0 = arith.constant 0 : i32
    %c0_i32_1 = arith.constant 0 : i32
    %c0_i32_2 = arith.constant 0 : i32
    return %c0_i32, %c0_i32_0, %c0_i32_1 : i32, i32, i32
  }
  func.func @transform_8(%arg0: i32, %arg1: i32) -> (i32, i32, i32) {
    %c0_i32 = arith.constant 0 : i32
    %c0_i32_0 = arith.constant 0 : i32
    return %arg0, %arg1, %c0_i32 : i32, i32, i32
  }
}

</mosaic_0001>

<bundles_post_ra>
// kernel: tpu_custom_call.1
= control target key start
LH: loop header
LB: loop body
LE: loop exit
PB: predicated region body
PF: predicated region fallthrough
CT: control target
= control target key end

     0   :  { %v435_v2 = vmov 0   ;;  %vm62_vm0 = vcmask 392192   ;;  %v43_v39 = vlaneseq  ;;  %s583_s1 = inlined_call_operand.vmem [shape: f32[48,32], index: 1, kind: input, shape index: {}]   ;;  %s584_s3 = inlined_call_operand.vmem [shape: s32[2,9,1], index: 3, kind: input, shape index: {}]   ;;  %s585_s0 = inlined_call_operand.vmem [shape: f32[2,9,48], index: 0, kind: input, shape index: {}]   ;;  %s586_s7 = inlined_call_operand.vmem [shape: f32[1,9,32], index: 7, kind: input, shape index: {}]   ;;  %s587_s5 = inlined_call_operand.vmem [shape: f32[1,32], index: 5, kind: input, shape index: {}]   ;;  %s588_s6 = inlined_call_operand.vmem [shape: f32[2,32], index: 6, kind: input, shape index: {}]   ;;  %s589_s2 = inlined_call_operand.vmem [shape: f32[1,32], index: 2, kind: input, shape index: {}]   ;;  %s590_s4 = inlined_call_operand.vmem [shape: f32[1,32], index: 4, kind: input, shape index: {}]   ;;  %s591_s8 = inlined_call_operand.vmem [shape: f32[2,9,32], index: 8, kind: output, shape index: {}]  }
   0x1   :  { %v34_v0 = vld [vmem:[%s583_s1 + $0x28] sm:$0xff]  ;;  %v33_v1 = vld [vmem:[%s583_s1 + $0x20] sm:$0xff]  ;;  %434 = vset.pattern.permute.xlu1 %v435_v2  ;;  %433 = vset.pattern.permute.xlu0 %v435_v2  ;;  %v32_v3 = vld [vmem:[%s583_s1 + $0x18] sm:$0xff] }
   0x2   :  { %402 = vmatprep.subr.mxu0 %v34_v0  ;;  %417 = vmatprep.subr.mxu1 %v34_v0  ;;  %v31_v4 = vld [vmem:[%s583_s1 + $0x10] sm:$0xff]  ;;  %v30_v5 = vld [vmem:[%s583_s1 + $0x8] sm:$0xff]  ;;  %v144_v7 = vld [vmem:[%s584_s3] sm:$0xff]  ;;  %v543_v42 = vshrl.u32 %v43_v39, 7 }
   0x3   :  { %403 = vmatpush3.msra.mxu0 %v34_v0  ;;  %418 = vmatpush3.msra.mxu1 %v34_v0  ;;  %v382_v6 = vld [vmem:[%s584_s3 + $0x10] sm:$0xff]  ;;  %v29_v8 = vld [vmem:[%s583_s1] sm:$0xff]  ;;  %v145_v9 = vld [vmem:[%s584_s3 + $0x8] sm:$0x1]  ;;  %vm146_vm2 = vcmp.eq.s32.totalorder %v144_v7, 9 }
   0x4   :  { %404 = vmatprep.subr.mxu0 %v33_v1  ;;  %419 = vmatprep.subr.mxu1 %v33_v1  ;;  %v54_v10 = vld [vmem:[%s585_s0] sm:$0xff]  ;;  %vm313_vm1 = vcmp.eq.s32.totalorder %v382_v6, 9  ;;  %v378_v11 = vld [vmem:[%s585_s0 + $0x10] sm:$0xff]  ;;  %v166_v13 = vsel %vm146_vm2, 0, %v144_v7  ;;  %v55_v14 = vld [vmem:[%s585_s0 + $0x8] sm:$0x1] }
   0x5   :  { %405 = vmatpush3.msra.mxu0 %v33_v1  ;;  %420 = vmatpush3.msra.mxu1 %v33_v1  ;;  %v327_v12 = vsel %vm313_vm1, 0, %v382_v6  ;;  %v379_v15 = vld [vmem:[%s585_s0 + $0x18] sm:$0x1]  ;;  %vm147_vm3 = vcmp.eq.s32.totalorder %v145_v9, 9  ;;  %v315_v16 = vsel %vm313_vm1, 1, %v435_v2  ;;  %v148_v17 = vsel %vm146_vm2, 1, %v435_v2 }
   0x6   :  { %406 = vmatprep.subr.mxu0 %v32_v3  ;;  %421 = vmatprep.subr.mxu1 %v32_v3  ;;  %v383_v18 = vld [vmem:[%s584_s3 + $0x18] sm:$0x1]  ;;  %vm329_vm4 = vcmp.eq.s32.totalorder %v327_v12, 0  ;;  %vm168_vm5 = vcmp.eq.s32.totalorder %v166_v13, 0  ;;  %v167_v19 = vsel %vm147_vm3, 0, %v145_v9  ;;  %v149_v24 = vsel %vm147_vm3, 1, %v435_v2 }
   0x7   :  { %407 = vmatpush3.msra.mxu0 %v32_v3  ;;  %422 = vmatpush3.msra.mxu1 %v32_v3  ;;  %vm314_vm6 = vcmp.eq.s32.totalorder %v383_v18, 9  ;;  %v331_v20 = vsel %vm329_vm4, 1, %v435_v2  ;;  %v170_v21 = vsel %vm168_vm5, 1, %v435_v2  ;;  %vm169_vm7 = vcmp.eq.s32.totalorder %v167_v19, 0  ;;  %v37_v43 = vld [vmem:[%s586_s7] sm:$0xff] }
   0x8   :  { %408 = vmatprep.subr.mxu0 %v31_v4  ;;  %423 = vmatprep.subr.mxu1 %v31_v4  ;;  %v328_v22 = vsel %vm314_vm6, 0, %v383_v18  ;;  %v171_v23 = vsel %vm169_vm7, 1, %v435_v2  ;;  %v316_v26 = vsel %vm314_vm6, 1, %v435_v2  ;;  %vm345_vm9 = vcmp.eq.s32.totalorder %v327_v12, 1  ;;  %v41_v44 = vld [vmem:[%s587_s5] sm:$0x1] }
   0x9   :  { %409 = vmatpush3.msra.mxu0 %v31_v4  ;;  %424 = vmatpush3.msra.mxu1 %v31_v4  ;;  %vm330_vm8 = vcmp.eq.s32.totalorder %v328_v22, 0  ;;  %vm188_vm10 = vcmp.eq.s32.totalorder %v166_v13, 1  ;;  %v347_v27 = vsel %vm345_vm9, 1, %v435_v2  ;;  %vm346_vm11 = vcmp.eq.s32.totalorder %v328_v22, 1  ;;  %v376_v45 = vld [vmem:[%s588_s6] ss:$0 sm:$0xff] }
   0xa   :  { %410 = vmatprep.subr.mxu0 %v30_v5  ;;  %425 = vmatprep.subr.mxu1 %v30_v5  ;;  %v332_v25 = vsel %vm330_vm8, 1, %v435_v2  ;;  %v190_v28 = vsel %vm188_vm10, 1, %v435_v2  ;;  %vm189_vm12 = vcmp.eq.s32.totalorder %v167_v19, 1  ;;  %v348_v29 = vsel %vm346_vm11, 1, %v435_v2  ;;  %v372_v46 = vld [vmem:[%s589_s2] ss:$0 sm:$0xff] }
   0xb   :  { %411 = vmatpush3.msra.mxu0 %v30_v5  ;;  %426 = vmatpush3.msra.mxu1 %v30_v5  ;;  %v191_v30 = vsel %vm189_vm12, 1, %v435_v2  ;;  %v42_v49 = vadd.f32 %v41_v44, %v37_v43  ;;  %v217_v50 = vsub.s32 0, %v543_v42  ;;  %v375_v53 = vld [vmem:[%s590_s4] ss:$0 sm:$0xff]  ;;  %v377_v60 = vld [vmem:[%s588_s6 + $0x1] ss:$0 sm:$0xff] }
   0xc   :  { %412 = vmatprep.subr.mxu0 %v29_v8  ;;  %427 = vmatprep.subr.mxu1 %v29_v8  ;;  %v38_v7 = vld [vmem:[%s586_s7 + $0x8] sm:$0x1]  ;;  %vm224_vm9 = vcmask 253952   ;;  %vm46_vm10 = vcmp.eq.s32.totalorder %v543_v42, 0  ;;  %vm222_vm11 = vcmask 261120  }
   0xd   :  { %413 = vmatpush3.msra.mxu0 %v29_v8  ;;  %414 = vmatprep.mubr.msk.f32.mxu0 %vm62_vm0, %v54_v10 }
   0xe   :  { %428 = vmatpush3.msra.mxu1 %v29_v8  ;;  %429 = vmatprep.mubr.msk.f32.mxu1 %vm62_vm0, %v378_v11 }
   0xf   :  { %415 = vmatmul.mubr.msk.f32.vlgmr.msra.gmra.mxu0 %vm62_vm0, %v55_v14  ;;  %430 = vmatmul.mubr.msk.f32.vlgmr.msra.gmra.mxu1 %vm62_vm0, %v379_v15 }
  0x10   :  { %318 = vperm.xlu1 %434, %v315_v16   ;;  %151 = vperm.xlu0 %433, %v148_v17   ;;  %v218_v16 = vrot.slane %v42_v49, %v217_v50 }
  0x14   :  { %334 = vperm.xlu1 %434, %v331_v20   ;;  %173 = vperm.xlu0 %433, %v170_v21  }
  0x18   :  { %176 = vperm.xlu1 %434, %v171_v23   ;;  %154 = vperm.xlu0 %433, %v149_v24  }
  0x1c   :  { %337 = vperm.xlu1 %434, %v332_v25   ;;  %321 = vperm.xlu0 %433, %v316_v26  }
  0x20   :  { %350 = vperm.xlu1 %434, %v347_v27   ;;  %193 = vperm.xlu0 %433, %v190_v28  }
  0x24   :  { %353 = vperm.xlu1 %434, %v348_v29   ;;  %196 = vperm.xlu0 %433, %v191_v30  }
  0x8b   :  { %v319_v31 = vpop.permute.xlu1 %318  ;;  %v152_v32 = vpop.permute.xlu0 %151 }
  0x8c   :  { %vm323_vm1 = vcmp.eq.s32.totalorder %v319_v31, 1  ;;  %vm156_vm2 = vcmp.eq.s32.totalorder %v152_v32, 1 }
  0x8f   :  { %v335_v33 = vpop.permute.xlu1 %334  ;;  %v174_v34 = vpop.permute.xlu0 %173 }
  0x90   :  { %vm339_vm13 = vcmp.eq.s32.totalorder %v335_v33, 1  ;;  %vm178_vm14 = vcmp.eq.s32.totalorder %v174_v34, 1 }
  0x91   :  { %v341_v51 = vsel %vm339_vm13, %v376_v45, 0.0  ;;  %v184_v52 = vsel %vm178_vm14, %v376_v45, 0.0 }
  0x93   :  { %v177_v35 = vpop.permute.xlu1 %176  ;;  %v155_v36 = vpop.permute.xlu0 %154 }
  0x94   :  { %vm179_vm15 = vcmp.eq.s32.totalorder %v177_v35, 1  ;;  %vm157_vm3 = vcmp.eq.s32.totalorder %v155_v36, 1 }
  0x95   :  { %v185_v56 = vsel %vm179_vm15, %v376_v45, 0.0 }
  0x97   :  { %v338_v37 = vpop.permute.xlu1 %337  ;;  %v322_v38 = vpop.permute.xlu0 %321 }
  0x98   :  { %vm340_vm0 = vcmp.eq.s32.totalorder %v338_v37, 1  ;;  %vm324_vm4 = vcmp.eq.s32.totalorder %v322_v38, 1 }
  0x99   :  { %v342_v59 = vsel %vm340_vm0, %v376_v45, 0.0 }
  0x9b   :  { %v351_v40 = vpop.permute.xlu1 %350  ;;  %v194_v41 = vpop.permute.xlu0 %193 }
  0x9c   :  { %vm355_vm7 = vcmp.eq.s32.totalorder %v351_v40, 1  ;;  %vm198_vm8 = vcmp.eq.s32.totalorder %v194_v41, 1 }
  0x9d   :  { %v357_v14 = vsel %vm355_vm7, %v377_v60, 0.0  ;;  %v204_v15 = vsel %vm198_vm8, %v377_v60, 0.0 }
  0x9f   :  { %v354_v47 = vpop.permute.xlu1 %353  ;;  %v197_v48 = vpop.permute.xlu0 %196 }
  0xa0   :  { %vm356_vm5 = vcmp.eq.s32.totalorder %v354_v47, 1  ;;  %vm199_vm6 = vcmp.eq.s32.totalorder %v197_v48, 1 }
  0xa1   :  { %v358_v5 = vsel %vm356_vm5, %v377_v60, 0.0  ;;  %v205_v6 = vsel %vm199_vm6, %v377_v60, 0.0 }
  0xcf   :  { %v416_v54 = vpop.f32.mrf.mxu0  ;;  %v431_v55 = vpop.f32.mrf.mxu1 }
  0xd0   :  { %v141_v57 = vadd.f32 %v416_v54, %v372_v46  ;;  %v307_v58 = vadd.f32 %v431_v55, %v372_v46 }
  0xd1   :  { %v135_v61 = vpop.f32.mrf.mxu0  ;;  %v301_v62 = vpop.f32.mrf.mxu1 }
  0xd2   :  { %v165_v63 = vsel %vm157_vm3, %v375_v53, %v141_v57  ;;  %v326_v0 = vsel %vm324_vm4, %v375_v53, %v307_v58  ;;  %v136_v1 = vadd.f32 %v372_v46, %v135_v61  ;;  %v302_v2 = vadd.f32 %v372_v46, %v301_v62 }
  0xd3   :  { %v187_v3 = vadd.f32 %v185_v56, %v165_v63  ;;  %v344_v4 = vadd.f32 %v342_v59, %v326_v0 }
  0xd4   :  { %v164_v8 = vsel %vm156_vm2, %v375_v53, %v136_v1  ;;  %v325_v9 = vsel %vm323_vm1, %v375_v53, %v302_v2 }
  0xd5   :  { %v207_v10 = vadd.f32 %v205_v6, %v187_v3  ;;  %v360_v11 = vadd.f32 %v358_v5, %v344_v4  ;;  %v186_v12 = vadd.f32 %v184_v52, %v164_v8  ;;  %v343_v13 = vadd.f32 %v341_v51, %v325_v9 }
  0xd7   :  { %v209_v17 = vadd.f32 %v207_v10, %v38_v7  ;;  %v362_v18 = vadd.f32 %v360_v11, %v38_v7  ;;  %v206_v19 = vadd.f32 %v204_v15, %v186_v12  ;;  %v359_v20 = vadd.f32 %v357_v14, %v343_v13 }
  0xd9   :  { %225 = vst.msk [vmem:[%s591_s8 + $0x8] sm:$0x1] %vm224_vm9, %v209_v17  ;;  %385 = vst.msk [vmem:[%s591_s8 + $0x18] sm:$0x1] %vm224_vm9, %v362_v18  ;;  %v208_v21 = vadd.f32 %v206_v19, %v37_v43  ;;  %v361_v22 = vadd.f32 %v359_v20, %v37_v43 }
  0xdb   :  { %v220_v23 = vsel %vm46_vm10, %v218_v16, %v208_v21  ;;  %v363_v24 = vsel %vm46_vm10, %v218_v16, %v361_v22 }
  0xdc   :  { %223 = vst.msk [vmem:[%s591_s8] sm:$0xff] %vm222_vm11, %v220_v23  ;;  %384 = vst.msk [vmem:[%s591_s8 + $0x10] sm:$0xff] %vm222_vm11, %v363_v24 }

// kernel: tpu_custom_call.1
= control target key start
LH: loop header
LB: loop body
LE: loop exit
PB: predicated region body
PF: predicated region fallthrough
CT: control target
= control target key end

     0   :  { %v435_v2 = vmov 0   ;;  %vm62_vm0 = vcmask 392192   ;;  %v43_v39 = vlaneseq  ;;  %s583_s1 = inlined_call_operand.vmem [shape: f32[48,32], index: 1, kind: input, shape index: {}]   ;;  %s584_s3 = inlined_call_operand.vmem [shape: s32[2,9,1], index: 3, kind: input, shape index: {}]   ;;  %s585_s0 = inlined_call_operand.vmem [shape: f32[2,9,48], index: 0, kind: input, shape index: {}]   ;;  %s586_s7 = inlined_call_operand.vmem [shape: f32[1,9,32], index: 7, kind: input, shape index: {}]   ;;  %s587_s5 = inlined_call_operand.vmem [shape: f32[1,32], index: 5, kind: input, shape index: {}]   ;;  %s588_s6 = inlined_call_operand.vmem [shape: f32[2,32], index: 6, kind: input, shape index: {}]   ;;  %s589_s2 = inlined_call_operand.vmem [shape: f32[1,32], index: 2, kind: input, shape index: {}]   ;;  %s590_s4 = inlined_call_operand.vmem [shape: f32[1,32], index: 4, kind: input, shape index: {}]   ;;  %s591_s8 = inlined_call_operand.vmem [shape: f32[2,9,32], index: 8, kind: output, shape index: {}]  }
   0x1   :  { %v34_v0 = vld [vmem:[%s583_s1 + $0x28] sm:$0xff]  ;;  %v33_v1 = vld [vmem:[%s583_s1 + $0x20] sm:$0xff]  ;;  %434 = vset.pattern.permute.xlu1 %v435_v2  ;;  %433 = vset.pattern.permute.xlu0 %v435_v2  ;;  %v32_v3 = vld [vmem:[%s583_s1 + $0x18] sm:$0xff] }
   0x2   :  { %402 = vmatprep.subr.mxu0 %v34_v0  ;;  %417 = vmatprep.subr.mxu1 %v34_v0  ;;  %v31_v4 = vld [vmem:[%s583_s1 + $0x10] sm:$0xff]  ;;  %v30_v5 = vld [vmem:[%s583_s1 + $0x8] sm:$0xff]  ;;  %v144_v7 = vld [vmem:[%s584_s3] sm:$0xff]  ;;  %v543_v42 = vshrl.u32 %v43_v39, 7 }
   0x3   :  { %403 = vmatpush3.msra.mxu0 %v34_v0  ;;  %418 = vmatpush3.msra.mxu1 %v34_v0  ;;  %v382_v6 = vld [vmem:[%s584_s3 + $0x10] sm:$0xff]  ;;  %v29_v8 = vld [vmem:[%s583_s1] sm:$0xff]  ;;  %v145_v9 = vld [vmem:[%s584_s3 + $0x8] sm:$0x1]  ;;  %vm146_vm2 = vcmp.eq.s32.totalorder %v144_v7, 9 }
   0x4   :  { %404 = vmatprep.subr.mxu0 %v33_v1  ;;  %419 = vmatprep.subr.mxu1 %v33_v1  ;;  %v54_v10 = vld [vmem:[%s585_s0] sm:$0xff]  ;;  %vm313_vm1 = vcmp.eq.s32.totalorder %v382_v6, 9  ;;  %v378_v11 = vld [vmem:[%s585_s0 + $0x10] sm:$0xff]  ;;  %v166_v13 = vsel %vm146_vm2, 0, %v144_v7  ;;  %v55_v14 = vld [vmem:[%s585_s0 + $0x8] sm:$0x1] }
   0x5   :  { %405 = vmatpush3.msra.mxu0 %v33_v1  ;;  %420 = vmatpush3.msra.mxu1 %v33_v1  ;;  %v327_v12 = vsel %vm313_vm1, 0, %v382_v6  ;;  %v379_v15 = vld [vmem:[%s585_s0 + $0x18] sm:$0x1]  ;;  %vm147_vm3 = vcmp.eq.s32.totalorder %v145_v9, 9  ;;  %v315_v16 = vsel %vm313_vm1, 1, %v435_v2  ;;  %v148_v17 = vsel %vm146_vm2, 1, %v435_v2 }
   0x6   :  { %406 = vmatprep.subr.mxu0 %v32_v3  ;;  %421 = vmatprep.subr.mxu1 %v32_v3  ;;  %v383_v18 = vld [vmem:[%s584_s3 + $0x18] sm:$0x1]  ;;  %vm329_vm4 = vcmp.eq.s32.totalorder %v327_v12, 0  ;;  %vm168_vm5 = vcmp.eq.s32.totalorder %v166_v13, 0  ;;  %v167_v19 = vsel %vm147_vm3, 0, %v145_v9  ;;  %v149_v24 = vsel %vm147_vm3, 1, %v435_v2 }
   0x7   :  { %407 = vmatpush3.msra.mxu0 %v32_v3  ;;  %422 = vmatpush3.msra.mxu1 %v32_v3  ;;  %vm314_vm6 = vcmp.eq.s32.totalorder %v383_v18, 9  ;;  %v331_v20 = vsel %vm329_vm4, 1, %v435_v2  ;;  %v170_v21 = vsel %vm168_vm5, 1, %v435_v2  ;;  %vm169_vm7 = vcmp.eq.s32.totalorder %v167_v19, 0  ;;  %v37_v43 = vld [vmem:[%s586_s7] sm:$0xff] }
   0x8   :  { %408 = vmatprep.subr.mxu0 %v31_v4  ;;  %423 = vmatprep.subr.mxu1 %v31_v4  ;;  %v328_v22 = vsel %vm314_vm6, 0, %v383_v18  ;;  %v171_v23 = vsel %vm169_vm7, 1, %v435_v2  ;;  %v316_v26 = vsel %vm314_vm6, 1, %v435_v2  ;;  %vm345_vm9 = vcmp.eq.s32.totalorder %v327_v12, 1  ;;  %v41_v44 = vld [vmem:[%s587_s5] sm:$0x1] }
   0x9   :  { %409 = vmatpush3.msra.mxu0 %v31_v4  ;;  %424 = vmatpush3.msra.mxu1 %v31_v4  ;;  %vm330_vm8 = vcmp.eq.s32.totalorder %v328_v22, 0  ;;  %vm188_vm10 = vcmp.eq.s32.totalorder %v166_v13, 1  ;;  %v347_v27 = vsel %vm345_vm9, 1, %v435_v2  ;;  %vm346_vm11 = vcmp.eq.s32.totalorder %v328_v22, 1  ;;  %v376_v45 = vld [vmem:[%s588_s6] ss:$0 sm:$0xff] }
   0xa   :  { %410 = vmatprep.subr.mxu0 %v30_v5  ;;  %425 = vmatprep.subr.mxu1 %v30_v5  ;;  %v332_v25 = vsel %vm330_vm8, 1, %v435_v2  ;;  %v190_v28 = vsel %vm188_vm10, 1, %v435_v2  ;;  %vm189_vm12 = vcmp.eq.s32.totalorder %v167_v19, 1  ;;  %v348_v29 = vsel %vm346_vm11, 1, %v435_v2  ;;  %v372_v46 = vld [vmem:[%s589_s2] ss:$0 sm:$0xff] }
   0xb   :  { %411 = vmatpush3.msra.mxu0 %v30_v5  ;;  %426 = vmatpush3.msra.mxu1 %v30_v5  ;;  %v191_v30 = vsel %vm189_vm12, 1, %v435_v2  ;;  %v42_v49 = vadd.f32 %v41_v44, %v37_v43  ;;  %v217_v50 = vsub.s32 0, %v543_v42  ;;  %v375_v53 = vld [vmem:[%s590_s4] ss:$0 sm:$0xff]  ;;  %v377_v60 = vld [vmem:[%s588_s6 + $0x1] ss:$0 sm:$0xff] }
   0xc   :  { %412 = vmatprep.subr.mxu0 %v29_v8  ;;  %427 = vmatprep.subr.mxu1 %v29_v8  ;;  %v38_v7 = vld [vmem:[%s586_s7 + $0x8] sm:$0x1]  ;;  %vm224_vm9 = vcmask 253952   ;;  %vm46_vm10 = vcmp.eq.s32.totalorder %v543_v42, 0  ;;  %vm222_vm11 = vcmask 261120  }
   0xd   :  { %413 = vmatpush3.msra.mxu0 %v29_v8  ;;  %414 = vmatprep.mubr.msk.f32.mxu0 %vm62_vm0, %v54_v10 }
   0xe   :  { %428 = vmatpush3.msra.mxu1 %v29_v8  ;;  %429 = vmatprep.mubr.msk.f32.mxu1 %vm62_vm0, %v378_v11 }
   0xf   :  { %415 = vmatmul.mubr.msk.f32.vlgmr.msra.gmra.mxu0 %vm62_vm0, %v55_v14  ;;  %430 = vmatmul.mubr.msk.f32.vlgmr.msra.gmra.mxu1 %vm62_vm0, %v379_v15 }
  0x10   :  { %318 = vperm.xlu1 %434, %v315_v16   ;;  %151 = vperm.xlu0 %433, %v148_v17   ;;  %v218_v16 = vrot.slane %v42_v49, %v217_v50 }
  0x14   :  { %334 = vperm.xlu1 %434, %v331_v20   ;;  %173 = vperm.xlu0 %433, %v170_v21  }
  0x18   :  { %176 = vperm.xlu1 %434, %v171_v23   ;;  %154 = vperm.xlu0 %433, %v149_v24  }
  0x1c   :  { %337 = vperm.xlu1 %434, %v332_v25   ;;  %321 = vperm.xlu0 %433, %v316_v26  }
  0x20   :  { %350 = vperm.xlu1 %434, %v347_v27   ;;  %193 = vperm.xlu0 %433, %v190_v28  }
  0x24   :  { %353 = vperm.xlu1 %434, %v348_v29   ;;  %196 = vperm.xlu0 %433, %v191_v30  }
  0x8b   :  { %v319_v31 = vpop.permute.xlu1 %318  ;;  %v152_v32 = vpop.permute.xlu0 %151 }
  0x8c   :  { %vm323_vm1 = vcmp.eq.s32.totalorder %v319_v31, 1  ;;  %vm156_vm2 = vcmp.eq.s32.totalorder %v152_v32, 1 }
  0x8f   :  { %v335_v33 = vpop.permute.xlu1 %334  ;;  %v174_v34 = vpop.permute.xlu0 %173 }
  0x90   :  { %vm339_vm13 = vcmp.eq.s32.totalorder %v335_v33, 1  ;;  %vm178_vm14 = vcmp.eq.s32.totalorder %v174_v34, 1 }
  0x91   :  { %v341_v51 = vsel %vm339_vm13, %v376_v45, 0.0  ;;  %v184_v52 = vsel %vm178_vm14, %v376_v45, 0.0 }
  0x93   :  { %v177_v35 = vpop.permute.xlu1 %176  ;;  %v155_v36 = vpop.permute.xlu0 %154 }
  0x94   :  { %vm179_vm15 = vcmp.eq.s32.totalorder %v177_v35, 1  ;;  %vm157_vm3 = vcmp.eq.s32.totalorder %v155_v36, 1 }
  0x95   :  { %v185_v56 = vsel %vm179_vm15, %v376_v45, 0.0 }
  0x97   :  { %v338_v37 = vpop.permute.xlu1 %337  ;;  %v322_v38 = vpop.permute.xlu0 %321 }
  0x98   :  { %vm340_vm0 = vcmp.eq.s32.totalorder %v338_v37, 1  ;;  %vm324_vm4 = vcmp.eq.s32.totalorder %v322_v38, 1 }
  0x99   :  { %v342_v59 = vsel %vm340_vm0, %v376_v45, 0.0 }
  0x9b   :  { %v351_v40 = vpop.permute.xlu1 %350  ;;  %v194_v41 = vpop.permute.xlu0 %193 }
  0x9c   :  { %vm355_vm7 = vcmp.eq.s32.totalorder %v351_v40, 1  ;;  %vm198_vm8 = vcmp.eq.s32.totalorder %v194_v41, 1 }
  0x9d   :  { %v357_v14 = vsel %vm355_vm7, %v377_v60, 0.0  ;;  %v204_v15 = vsel %vm198_vm8, %v377_v60, 0.0 }
  0x9f   :  { %v354_v47 = vpop.permute.xlu1 %353  ;;  %v197_v48 = vpop.permute.xlu0 %196 }
  0xa0   :  { %vm356_vm5 = vcmp.eq.s32.totalorder %v354_v47, 1  ;;  %vm199_vm6 = vcmp.eq.s32.totalorder %v197_v48, 1 }
  0xa1   :  { %v358_v5 = vsel %vm356_vm5, %v377_v60, 0.0  ;;  %v205_v6 = vsel %vm199_vm6, %v377_v60, 0.0 }
  0xcf   :  { %v416_v54 = vpop.f32.mrf.mxu0  ;;  %v431_v55 = vpop.f32.mrf.mxu1 }
  0xd0   :  { %v141_v57 = vadd.f32 %v416_v54, %v372_v46  ;;  %v307_v58 = vadd.f32 %v431_v55, %v372_v46 }
  0xd1   :  { %v135_v61 = vpop.f32.mrf.mxu0  ;;  %v301_v62 = vpop.f32.mrf.mxu1 }
  0xd2   :  { %v165_v63 = vsel %vm157_vm3, %v375_v53, %v141_v57  ;;  %v326_v0 = vsel %vm324_vm4, %v375_v53, %v307_v58  ;;  %v136_v1 = vadd.f32 %v372_v46, %v135_v61  ;;  %v302_v2 = vadd.f32 %v372_v46, %v301_v62 }
  0xd3   :  { %v187_v3 = vadd.f32 %v185_v56, %v165_v63  ;;  %v344_v4 = vadd.f32 %v342_v59, %v326_v0 }
  0xd4   :  { %v164_v8 = vsel %vm156_vm2, %v375_v53, %v136_v1  ;;  %v325_v9 = vsel %vm323_vm1, %v375_v53, %v302_v2 }
  0xd5   :  { %v207_v10 = vadd.f32 %v205_v6, %v187_v3  ;;  %v360_v11 = vadd.f32 %v358_v5, %v344_v4  ;;  %v186_v12 = vadd.f32 %v184_v52, %v164_v8  ;;  %v343_v13 = vadd.f32 %v341_v51, %v325_v9 }
  0xd7   :  { %v209_v17 = vadd.f32 %v207_v10, %v38_v7  ;;  %v362_v18 = vadd.f32 %v360_v11, %v38_v7  ;;  %v206_v19 = vadd.f32 %v204_v15, %v186_v12  ;;  %v359_v20 = vadd.f32 %v357_v14, %v343_v13 }
  0xd9   :  { %225 = vst.msk [vmem:[%s591_s8 + $0x8] sm:$0x1] %vm224_vm9, %v209_v17  ;;  %385 = vst.msk [vmem:[%s591_s8 + $0x18] sm:$0x1] %vm224_vm9, %v362_v18  ;;  %v208_v21 = vadd.f32 %v206_v19, %v37_v43  ;;  %v361_v22 = vadd.f32 %v359_v20, %v37_v43 }
  0xdb   :  { %v220_v23 = vsel %vm46_vm10, %v218_v16, %v208_v21  ;;  %v363_v24 = vsel %vm46_vm10, %v218_v16, %v361_v22 }
  0xdc   :  { %223 = vst.msk [vmem:[%s591_s8] sm:$0xff] %vm222_vm11, %v220_v23  ;;  %384 = vst.msk [vmem:[%s591_s8 + $0x10] sm:$0xff] %vm222_vm11, %v363_v24 }

</bundles_post_ra>
